<compile_context>
chip_gen: v7x
topology: tpu7x:2x2x1
jax: 0.10.0
libtpu: 0.0.40
codegen_flags: <defaults>
</compile_context>

<pallas_src>
import functools
import math

import jax
import jax.numpy as jnp
from jax.experimental import pallas as pl
from jax.experimental.pallas import tpu as pltpu

LN_EPS = 1e-5  # PyTorch nn.LayerNorm default


def _round_up(x, m):
    return ((x + m - 1) // m) * m


def _layer_norm_cols(v, gamma, beta):
    """LayerNorm over axis 0 (features on sublanes, batch on lanes)."""
    mu = jnp.mean(v, axis=0, keepdims=True)
    d = v - mu
    var = jnp.mean(d * d, axis=0, keepdims=True)
    return d * jax.lax.rsqrt(var + LN_EPS) * gamma + beta


# -----------------------------------------------------------------------------
# Kernel  (one batch tile, batch on the lane axis)
# -----------------------------------------------------------------------------
def qcritic_kernel(x_ref, w1_ref, w2_ref, wq_ref,
                   fng_ref, fnb_ref, b1_ref, g1_ref, be1_ref,
                   b2_ref, g2_ref, be2_ref, bq_ref, q_ref, *, d_in):
    """x_ref: (d_pad, TB) transposed [obs|act] tile -> q_ref: (1, TB).

    Weights are stored transposed: w1_ref (h1, d_pad), w2_ref (h2, h1),
    wq_ref (1, h2).  Vector params are column vectors (dim, 1) that broadcast
    along the lane (batch) axis.  Feature rows d_in..d_pad of x / w1 / fn_g /
    fn_b are zero padding.
    """
    d_pad = x_ref.shape[0]
    x = x_ref[...]                                        # (d_pad, TB)

    # --- MLPBase.feature_norm: LayerNorm over the d_in real feature rows.
    inv_d = 1.0 / d_in
    mu = jnp.sum(x, axis=0, keepdims=True) * inv_d        # (1, TB)
    dd = x - mu
    ssq = jnp.sum(dd * dd, axis=0, keepdims=True)
    extra = d_pad - d_in
    if extra:  # zero pad rows contributed mu^2 each to ssq; remove exactly.
        ssq = ssq - float(extra) * (mu * mu)
    inv = jax.lax.rsqrt(ssq * inv_d + LN_EPS)             # (1, TB)
    nx = dd * inv * fng_ref[...] + fnb_ref[...]           # (d_pad, TB)

    # --- MLP layer 1: single K=d_pad matmul -> ReLU -> LayerNorm
    h = jnp.dot(w1_ref[...], nx, preferred_element_type=jnp.float32)  # (h1, TB)
    h = jnp.maximum(h + b1_ref[...], 0.0)
    h = _layer_norm_cols(h, g1_ref[...], be1_ref[...])

    # --- MLP layer 2: Linear -> ReLU -> LayerNorm
    h = jnp.dot(w2_ref[...], h, preferred_element_type=jnp.float32)   # (h2, TB)
    h = jnp.maximum(h + b2_ref[...], 0.0)
    h = _layer_norm_cols(h, g2_ref[...], be2_ref[...])

    # --- q_out: plain (1, h2) @ (h2, TB), lane-dense output row.
    q = jnp.dot(wq_ref[...], h, preferred_element_type=jnp.float32)   # (1, TB)
    q_ref[...] = q + bq_ref[...]


# -----------------------------------------------------------------------------
# Wrapper
# -----------------------------------------------------------------------------
def _choose_tile(batch, tb_max):
    b128 = _round_up(max(batch, 1), 128)
    if b128 <= 128:
        return 128
    # >= 2 tiles whenever B > 128 so both v7x TensorCores get grid steps.
    half = (b128 // 2) // 128 * 128
    return max(128, min(int(tb_max), half))


@functools.partial(jax.jit, static_argnames=("tb_max",))
def qcritic_forward(cent_obs, actions, rnn_states, masks, packed, tb_max=4096):
    """Mirrors QCritic.forward: returns (q_values, rnn_states)."""
    cent_obs = cent_obs.astype(jnp.float32)
    rnn_states = rnn_states.astype(jnp.float32)
    masks = masks.astype(jnp.float32)            # unused: use_recurrent_policy=False
    actions = actions.reshape(actions.shape[0], -1).astype(jnp.float32)

    B = cent_obs.shape[0]
    d_in = cent_obs.shape[1] + actions.shape[1]
    w1T = packed["w1T"]
    h1, d_pad = w1T.shape
    h2 = packed["w2T"].shape[0]

    tb = _choose_tile(B, tb_max)
    b_pad = _round_up(B, tb)
    n_tiles = b_pad // tb

    # Fused concat: build [obs | act], zero-pad batch + feature dims, transpose
    # so the kernel sees batch on the lane axis.
    x = jnp.concatenate([cent_obs, actions], axis=-1)               # (B, d_in)
    xT = jnp.pad(x, ((0, b_pad - B), (0, d_pad - d_in))).T          # (d_pad, b_pad)

    param_order = ("w1T", "w2T", "wqT", "fn_g", "fn_b", "b1", "ln1_g", "ln1_b",
                   "b2", "ln2_g", "ln2_b", "bq")
    param_arrays = [packed[k] for k in param_order]

    kernel = functools.partial(qcritic_kernel, d_in=d_in)

    flops = 2 * b_pad * (d_pad * h1 + h1 * h2 + h2)
    bytes_accessed = 4 * (b_pad * (d_pad + 1)
                          + sum(int(a.size) for a in param_arrays))
    cost = pl.CostEstimate(flops=flops, transcendentals=3 * b_pad,
                           bytes_accessed=bytes_accessed)

    def resident(a):  # VMEM-resident across all grid steps
        return pl.BlockSpec(a.shape, lambda i: (0, 0))

    q_rows = pl.pallas_call(
        kernel,
        out_shape=jax.ShapeDtypeStruct((1, b_pad), jnp.float32),
        grid=(n_tiles,),
        in_specs=[pl.BlockSpec((d_pad, tb), lambda i: (0, i))]
                 + [resident(a) for a in param_arrays],
        out_specs=pl.BlockSpec((1, tb), lambda i: (0, i)),           # lane-dense
        compiler_params=pltpu.CompilerParams(
            dimension_semantics=("parallel",)),
        cost_estimate=cost,
    )(xT, *param_arrays)

    q_values = q_rows[0, :B].reshape(B, 1)
    return q_values, rnn_states


# -----------------------------------------------------------------------------
# Parameter construction / packing
# -----------------------------------------------------------------------------
def make_params(key, d_in, hidden_sizes):
    """Deterministic synthetic init (orthogonal weights, zero biases,
    LayerNorm gamma=1 / beta=0), matching the module's init_ scheme shapes."""
    h1, h2 = hidden_sizes
    k1, k2, k3 = jax.random.split(key, 3)
    ortho = jax.nn.initializers.orthogonal
    gain = math.sqrt(2.0)  # relu gain, as in HARL-style init
    return {
        "fn_g": jnp.ones((1, d_in), jnp.float32),
        "fn_b": jnp.zeros((1, d_in), jnp.float32),
        "w1": ortho(gain)(k1, (d_in, h1), jnp.float32),
        "b1": jnp.zeros((1, h1), jnp.float32),
        "ln1_g": jnp.ones((1, h1), jnp.float32),
        "ln1_b": jnp.zeros((1, h1), jnp.float32),
        "w2": ortho(gain)(k2, (h1, h2), jnp.float32),
        "b2": jnp.zeros((1, h2), jnp.float32),
        "ln2_g": jnp.ones((1, h2), jnp.float32),
        "ln2_b": jnp.zeros((1, h2), jnp.float32),
        "wq": ortho(1.0)(k3, (h2, 1), jnp.float32),
        "bq": jnp.zeros((1, 1), jnp.float32),
    }


def pack_params(params, d_in):
    """Pre-transpose / pre-pad parameters for the batch-on-lanes kernel:
       - weights stored transposed (output features on rows), layer-1
         contraction dim zero-padded to a multiple of 8 sublanes,
       - 1-D params stored as column vectors (dim, 1)."""
    d_pad = _round_up(d_in, 8)
    pad_f = d_pad - d_in

    def col(v):
        return jnp.asarray(v, jnp.float32).reshape(-1, 1)

    def padcol(v):
        return jnp.pad(col(v), ((0, pad_f), (0, 0)))

    w1T = jnp.pad(jnp.asarray(params["w1"], jnp.float32).T, ((0, 0), (0, pad_f)))
    return {
        "w1T": w1T,                                            # (h1, d_pad)
        "w2T": jnp.asarray(params["w2"], jnp.float32).T,       # (h2, h1)
        "wqT": jnp.asarray(params["wq"], jnp.float32).T,       # (1, h2)
        "fn_g": padcol(params["fn_g"]),                        # (d_pad, 1)
        "fn_b": padcol(params["fn_b"]),
        "b1": col(params["b1"]),                               # (h1, 1)
        "ln1_g": col(params["ln1_g"]),
        "ln1_b": col(params["ln1_b"]),
        "b2": col(params["b2"]),                               # (h2, 1)
        "ln2_g": col(params["ln2_g"]),
        "ln2_b": col(params["ln2_b"]),
        "bq": col(params["bq"]),                               # (1, 1)
    }


# -----------------------------------------------------------------------------
# Pure-JAX reference (same math, unpacked params)
# -----------------------------------------------------------------------------
def reference_forward(cent_obs, actions, rnn_states, masks, params):
    a = actions.reshape(actions.shape[0], -1).astype(jnp.float32)
    x = jnp.concatenate([cent_obs.astype(jnp.float32), a], axis=-1)

    def ln(v, g, b):
        mu = jnp.mean(v, -1, keepdims=True)
        var = jnp.mean((v - mu) ** 2, -1, keepdims=True)
        return (v - mu) / jnp.sqrt(var + LN_EPS) * g + b

    h = ln(x, params["fn_g"], params["fn_b"])
    h = jnp.maximum(h @ params["w1"] + params["b1"], 0.0)
    h = ln(h, params["ln1_g"], params["ln1_b"])
    h = jnp.maximum(h @ params["w2"] + params["b2"], 0.0)
    h = ln(h, params["ln2_g"], params["ln2_b"])
    q = h @ params["wq"] + params["bq"]
    return q, rnn_states.astype(jnp.float32)


if __name__ == "__main__":
    key = jax.random.PRNGKey(0)
    k_obs, k_act, k_rnn, k_par = jax.random.split(key, 4)

    batch = 8
    obs_dim = 16
    n_agents, act_dim = 2, 4          # act_spaces = [Box(4), Box(4)]
    hidden_sizes = (32, 32)
    recurrent_n = 1

    cent_obs = jax.random.normal(k_obs, (batch, obs_dim), jnp.float32)
    actions = jax.random.normal(k_act, (batch, n_agents, act_dim), jnp.float32)
    rnn_states = jax.random.normal(k_rnn, (batch, recurrent_n, hidden_sizes[-1]),
                                   jnp.float32)
    masks = jnp.ones((batch, 1), jnp.float32)

    d_in = obs_dim + n_agents * act_dim
    params = make_params(k_par, d_in, hidden_sizes)
    packed = pack_params(params, d_in)

    q_values, rnn_states_out = qcritic_forward(
        cent_obs, actions, rnn_states, masks, packed)
    q_values = jax.block_until_ready(q_values)
    rnn_states_out = jax.block_until_ready(rnn_states_out)

    q_ref, rnn_ref = reference_forward(cent_obs, actions, rnn_states, masks, params)
    assert q_values.shape == (batch, 1)
    assert rnn_states_out.shape == rnn_states.shape
    assert jnp.allclose(q_values, q_ref, atol=1e-4, rtol=1e-4), \
        float(jnp.max(jnp.abs(q_values - q_ref)))
    assert jnp.allclose(rnn_states_out, rnn_ref)

    print("KERNEL_OK")
</pallas_src>

<mosaic_0001>
module attributes {stable_mosaic.version = 11 : i64} {
  func.func @qcritic_kernel(%arg0: i32, %arg1: memref<24x128xf32, #tpu.memory_space<vmem>>, %arg2: memref<32x24xf32, #tpu.memory_space<vmem>>, %arg3: memref<32x32xf32, #tpu.memory_space<vmem>>, %arg4: memref<1x32xf32, #tpu.memory_space<vmem>>, %arg5: memref<24x1xf32, #tpu.memory_space<vmem>>, %arg6: memref<24x1xf32, #tpu.memory_space<vmem>>, %arg7: memref<32x1xf32, #tpu.memory_space<vmem>>, %arg8: memref<32x1xf32, #tpu.memory_space<vmem>>, %arg9: memref<32x1xf32, #tpu.memory_space<vmem>>, %arg10: memref<32x1xf32, #tpu.memory_space<vmem>>, %arg11: memref<32x1xf32, #tpu.memory_space<vmem>>, %arg12: memref<32x1xf32, #tpu.memory_space<vmem>>, %arg13: memref<1x1xf32, #tpu.memory_space<vmem>>, %arg14: memref<1x128xf32, #tpu.memory_space<vmem>>) attributes {dimension_semantics = [#tpu.dimension_semantics<parallel>], iteration_bounds = array<i64: 1>, scalar_prefetch = 0 : i64, scratch_operands = 0 : i64, tpu.core_type = #tpu.core_type<tc>, window_params = [{transform_indices = @transform_0, window_bounds = array<i64: 24, 128>}, {pipeline_mode = #tpu.pipeline_mode<synchronous>, transform_indices = @transform_1, window_bounds = array<i64: 32, 24>}, {pipeline_mode = #tpu.pipeline_mode<synchronous>, transform_indices = @transform_2, window_bounds = array<i64: 32, 32>}, {pipeline_mode = #tpu.pipeline_mode<synchronous>, transform_indices = @transform_3, window_bounds = array<i64: 1, 32>}, {pipeline_mode = #tpu.pipeline_mode<synchronous>, transform_indices = @transform_4, window_bounds = array<i64: 24, 1>}, {pipeline_mode = #tpu.pipeline_mode<synchronous>, transform_indices = @transform_5, window_bounds = array<i64: 24, 1>}, {pipeline_mode = #tpu.pipeline_mode<synchronous>, transform_indices = @transform_6, window_bounds = array<i64: 32, 1>}, {pipeline_mode = #tpu.pipeline_mode<synchronous>, transform_indices = @transform_7, window_bounds = array<i64: 32, 1>}, {pipeline_mode = #tpu.pipeline_mode<synchronous>, transform_indices = @transform_8, window_bounds = array<i64: 32, 1>}, {pipeline_mode = #tpu.pipeline_mode<synchronous>, transform_indices = @transform_9, window_bounds = array<i64: 32, 1>}, {pipeline_mode = #tpu.pipeline_mode<synchronous>, transform_indices = @transform_10, window_bounds = array<i64: 32, 1>}, {pipeline_mode = #tpu.pipeline_mode<synchronous>, transform_indices = @transform_11, window_bounds = array<i64: 32, 1>}, {pipeline_mode = #tpu.pipeline_mode<synchronous>, transform_indices = @transform_12, window_bounds = array<i64: 1, 1>}, {transform_indices = @transform_13, window_bounds = array<i64: 1, 128>}]} {
    %c0 = arith.constant 0 : index
    %c0_0 = arith.constant 0 : index
    %0 = vector.load %arg1[%c0, %c0_0] : memref<24x128xf32, #tpu.memory_space<vmem>>, vector<24x128xf32>
    %cst = arith.constant dense<0.000000e+00> : vector<128xf32>
    %1 = vector.multi_reduction <add>, %0, %cst [0] : vector<24x128xf32> to vector<128xf32>
    %2 = vector.shape_cast %1 : vector<128xf32> to vector<1x128xf32>
    %cst_1 = arith.constant 0.0416666679 : f32
    %3 = vector.broadcast %cst_1 : f32 to vector<1x128xf32>
    %4 = arith.mulf %2, %3 : vector<1x128xf32>
    %5 = vector.broadcast %4 : vector<1x128xf32> to vector<24x128xf32>
    %6 = arith.subf %0, %5 : vector<24x128xf32>
    %7 = arith.mulf %6, %6 : vector<24x128xf32>
    %cst_2 = arith.constant dense<0.000000e+00> : vector<128xf32>
    %8 = vector.multi_reduction <add>, %7, %cst_2 [0] : vector<24x128xf32> to vector<128xf32>
    %9 = vector.shape_cast %8 : vector<128xf32> to vector<1x128xf32>
    %cst_3 = arith.constant 0.0416666679 : f32
    %10 = vector.broadcast %cst_3 : f32 to vector<1x128xf32>
    %11 = arith.mulf %9, %10 : vector<1x128xf32>
    %cst_4 = arith.constant 9.99999974E-6 : f32
    %12 = vector.broadcast %cst_4 : f32 to vector<1x128xf32>
    %13 = arith.addf %11, %12 : vector<1x128xf32>
    %14 = math.rsqrt %13 : vector<1x128xf32>
    %15 = vector.broadcast %14 : vector<1x128xf32> to vector<24x128xf32>
    %16 = arith.mulf %6, %15 : vector<24x128xf32>
    %c0_5 = arith.constant 0 : index
    %c0_6 = arith.constant 0 : index
    %17 = vector.load %arg5[%c0_5, %c0_6] : memref<24x1xf32, #tpu.memory_space<vmem>>, vector<24x1xf32>
    %18 = vector.broadcast %17 : vector<24x1xf32> to vector<24x128xf32>
    %19 = arith.mulf %16, %18 : vector<24x128xf32>
    %c0_7 = arith.constant 0 : index
    %c0_8 = arith.constant 0 : index
    %20 = vector.load %arg6[%c0_7, %c0_8] : memref<24x1xf32, #tpu.memory_space<vmem>>, vector<24x1xf32>
    %21 = vector.broadcast %20 : vector<24x1xf32> to vector<24x128xf32>
    %22 = arith.addf %19, %21 : vector<24x128xf32>
    %c0_9 = arith.constant 0 : index
    %c0_10 = arith.constant 0 : index
    %23 = vector.load %arg2[%c0_9, %c0_10] : memref<32x24xf32, #tpu.memory_space<vmem>>, vector<32x24xf32>
    %cst_11 = arith.constant dense<0.000000e+00> : vector<32x128xf32>
    %24 = tpu.matmul %23, %22, %cst_11 {dimension_numbers = #tpu.dot_dimension_numbers<[1], [0], [0], [1], [0, 0, 1, 1], [], []>} : vector<32x24xf32>, vector<24x128xf32>, vector<32x128xf32> -> vector<32x128xf32>
    %c0_12 = arith.constant 0 : index
    %c0_13 = arith.constant 0 : index
    %25 = vector.load %arg7[%c0_12, %c0_13] : memref<32x1xf32, #tpu.memory_space<vmem>>, vector<32x1xf32>
    %26 = vector.broadcast %25 : vector<32x1xf32> to vector<32x128xf32>
    %27 = arith.addf %24, %26 : vector<32x128xf32>
    %cst_14 = arith.constant 0.000000e+00 : f32
    %28 = vector.broadcast %cst_14 : f32 to vector<32x128xf32>
    %29 = arith.maximumf %27, %28 : vector<32x128xf32>
    %c0_15 = arith.constant 0 : index
    %c0_16 = arith.constant 0 : index
    %30 = vector.load %arg8[%c0_15, %c0_16] : memref<32x1xf32, #tpu.memory_space<vmem>>, vector<32x1xf32>
    %c0_17 = arith.constant 0 : index
    %c0_18 = arith.constant 0 : index
    %31 = vector.load %arg9[%c0_17, %c0_18] : memref<32x1xf32, #tpu.memory_space<vmem>>, vector<32x1xf32>
    %cst_19 = arith.constant dense<0.000000e+00> : vector<128xf32>
    %32 = vector.multi_reduction <add>, %29, %cst_19 [0] : vector<32x128xf32> to vector<128xf32>
    %33 = vector.shape_cast %32 : vector<128xf32> to vector<1x128xf32>
    %cst_20 = arith.constant 3.200000e+01 : f32
    %34 = vector.broadcast %cst_20 : f32 to vector<1x128xf32>
    %35 = arith.divf %33, %34 : vector<1x128xf32>
    %36 = vector.broadcast %35 : vector<1x128xf32> to vector<32x128xf32>
    %37 = arith.subf %29, %36 : vector<32x128xf32>
    %38 = arith.mulf %37, %37 : vector<32x128xf32>
    %cst_21 = arith.constant dense<0.000000e+00> : vector<128xf32>
    %39 = vector.multi_reduction <add>, %38, %cst_21 [0] : vector<32x128xf32> to vector<128xf32>
    %40 = vector.shape_cast %39 : vector<128xf32> to vector<1x128xf32>
    %cst_22 = arith.constant 3.200000e+01 : f32
    %41 = vector.broadcast %cst_22 : f32 to vector<1x128xf32>
    %42 = arith.divf %40, %41 : vector<1x128xf32>
    %cst_23 = arith.constant 9.99999974E-6 : f32
    %43 = vector.broadcast %cst_23 : f32 to vector<1x128xf32>
    %44 = arith.addf %42, %43 : vector<1x128xf32>
    %45 = math.rsqrt %44 : vector<1x128xf32>
    %46 = vector.broadcast %45 : vector<1x128xf32> to vector<32x128xf32>
    %47 = arith.mulf %37, %46 : vector<32x128xf32>
    %48 = vector.broadcast %30 : vector<32x1xf32> to vector<32x128xf32>
    %49 = arith.mulf %47, %48 : vector<32x128xf32>
    %50 = vector.broadcast %31 : vector<32x1xf32> to vector<32x128xf32>
    %51 = arith.addf %49, %50 : vector<32x128xf32>
    %c0_24 = arith.constant 0 : index
    %c0_25 = arith.constant 0 : index
    %52 = vector.load %arg3[%c0_24, %c0_25] : memref<32x32xf32, #tpu.memory_space<vmem>>, vector<32x32xf32>
    %cst_26 = arith.constant dense<0.000000e+00> : vector<32x128xf32>
    %53 = tpu.matmul %52, %51, %cst_26 {dimension_numbers = #tpu.dot_dimension_numbers<[1], [0], [0], [1], [0, 0, 1, 1], [], []>} : vector<32x32xf32>, vector<32x128xf32>, vector<32x128xf32> -> vector<32x128xf32>
    %c0_27 = arith.constant 0 : index
    %c0_28 = arith.constant 0 : index
    %54 = vector.load %arg10[%c0_27, %c0_28] : memref<32x1xf32, #tpu.memory_space<vmem>>, vector<32x1xf32>
    %55 = vector.broadcast %54 : vector<32x1xf32> to vector<32x128xf32>
    %56 = arith.addf %53, %55 : vector<32x128xf32>
    %cst_29 = arith.constant 0.000000e+00 : f32
    %57 = vector.broadcast %cst_29 : f32 to vector<32x128xf32>
    %58 = arith.maximumf %56, %57 : vector<32x128xf32>
    %c0_30 = arith.constant 0 : index
    %c0_31 = arith.constant 0 : index
    %59 = vector.load %arg11[%c0_30, %c0_31] : memref<32x1xf32, #tpu.memory_space<vmem>>, vector<32x1xf32>
    %c0_32 = arith.constant 0 : index
    %c0_33 = arith.constant 0 : index
    %60 = vector.load %arg12[%c0_32, %c0_33] : memref<32x1xf32, #tpu.memory_space<vmem>>, vector<32x1xf32>
    %cst_34 = arith.constant dense<0.000000e+00> : vector<128xf32>
    %61 = vector.multi_reduction <add>, %58, %cst_34 [0] : vector<32x128xf32> to vector<128xf32>
    %62 = vector.shape_cast %61 : vector<128xf32> to vector<1x128xf32>
    %cst_35 = arith.constant 3.200000e+01 : f32
    %63 = vector.broadcast %cst_35 : f32 to vector<1x128xf32>
    %64 = arith.divf %62, %63 : vector<1x128xf32>
    %65 = vector.broadcast %64 : vector<1x128xf32> to vector<32x128xf32>
    %66 = arith.subf %58, %65 : vector<32x128xf32>
    %67 = arith.mulf %66, %66 : vector<32x128xf32>
    %cst_36 = arith.constant dense<0.000000e+00> : vector<128xf32>
    %68 = vector.multi_reduction <add>, %67, %cst_36 [0] : vector<32x128xf32> to vector<128xf32>
    %69 = vector.shape_cast %68 : vector<128xf32> to vector<1x128xf32>
    %cst_37 = arith.constant 3.200000e+01 : f32
    %70 = vector.broadcast %cst_37 : f32 to vector<1x128xf32>
    %71 = arith.divf %69, %70 : vector<1x128xf32>
    %cst_38 = arith.constant 9.99999974E-6 : f32
    %72 = vector.broadcast %cst_38 : f32 to vector<1x128xf32>
    %73 = arith.addf %71, %72 : vector<1x128xf32>
    %74 = math.rsqrt %73 : vector<1x128xf32>
    %75 = vector.broadcast %74 : vector<1x128xf32> to vector<32x128xf32>
    %76 = arith.mulf %66, %75 : vector<32x128xf32>
    %77 = vector.broadcast %59 : vector<32x1xf32> to vector<32x128xf32>
    %78 = arith.mulf %76, %77 : vector<32x128xf32>
    %79 = vector.broadcast %60 : vector<32x1xf32> to vector<32x128xf32>
    %80 = arith.addf %78, %79 : vector<32x128xf32>
    %c0_39 = arith.constant 0 : index
    %c0_40 = arith.constant 0 : index
    %81 = vector.load %arg4[%c0_39, %c0_40] : memref<1x32xf32, #tpu.memory_space<vmem>>, vector<1x32xf32>
    %cst_41 = arith.constant dense<0.000000e+00> : vector<1x128xf32>
    %82 = tpu.matmul %81, %80, %cst_41 {dimension_numbers = #tpu.dot_dimension_numbers<[1], [0], [0], [1], [0, 0, 1, 1], [], []>} : vector<1x32xf32>, vector<32x128xf32>, vector<1x128xf32> -> vector<1x128xf32>
    %c0_42 = arith.constant 0 : index
    %c0_43 = arith.constant 0 : index
    %83 = vector.load %arg13[%c0_42, %c0_43] : memref<1x1xf32, #tpu.memory_space<vmem>>, vector<1x1xf32>
    %84 = vector.broadcast %83 : vector<1x1xf32> to vector<1x128xf32>
    %85 = arith.addf %82, %84 : vector<1x128xf32>
    %c0_44 = arith.constant 0 : index
    %c0_45 = arith.constant 0 : index
    %86 = vector.load %arg14[%c0_44, %c0_45] : memref<1x128xf32, #tpu.memory_space<vmem>>, vector<1x128xf32>
    tpu.vector_store %arg14[%c0_44, %c0_45], %85 {strides = array<i32>} : memref<1x128xf32, #tpu.memory_space<vmem>>, vector<1x128xf32>,
    return
  }
  func.func @transform_0(%arg0: i32) -> (i32, i32) {
    %c0_i32 = arith.constant 0 : i32
    %c0_i32_0 = arith.constant 0 : i32
    return %c0_i32, %arg0 : i32, i32
  }
  func.func @transform_1(%arg0: i32) -> (i32, i32) {
    %c0_i32 = arith.constant 0 : i32
    %c0_i32_0 = arith.constant 0 : i32
    %c0_i32_1 = arith.constant 0 : i32
    return %c0_i32, %c0_i32_0 : i32, i32
  }
  func.func @transform_2(%arg0: i32) -> (i32, i32) {
    %c0_i32 = arith.constant 0 : i32
    %c0_i32_0 = arith.constant 0 : i32
    %c0_i32_1 = arith.constant 0 : i32
    return %c0_i32, %c0_i32_0 : i32, i32
  }
  func.func @transform_3(%arg0: i32) -> (i32, i32) {
    %c0_i32 = arith.constant 0 : i32
    %c0_i32_0 = arith.constant 0 : i32
    %c0_i32_1 = arith.constant 0 : i32
    return %c0_i32, %c0_i32_0 : i32, i32
  }
  func.func @transform_4(%arg0: i32) -> (i32, i32) {
    %c0_i32 = arith.constant 0 : i32
    %c0_i32_0 = arith.constant 0 : i32
    %c0_i32_1 = arith.constant 0 : i32
    return %c0_i32, %c0_i32_0 : i32, i32
  }
  func.func @transform_5(%arg0: i32) -> (i32, i32) {
    %c0_i32 = arith.constant 0 : i32
    %c0_i32_0 = arith.constant 0 : i32
    %c0_i32_1 = arith.constant 0 : i32
    return %c0_i32, %c0_i32_0 : i32, i32
  }
  func.func @transform_6(%arg0: i32) -> (i32, i32) {
    %c0_i32 = arith.constant 0 : i32
    %c0_i32_0 = arith.constant 0 : i32
    %c0_i32_1 = arith.constant 0 : i32
    return %c0_i32, %c0_i32_0 : i32, i32
  }
  func.func @transform_7(%arg0: i32) -> (i32, i32) {
    %c0_i32 = arith.constant 0 : i32
    %c0_i32_0 = arith.constant 0 : i32
    %c0_i32_1 = arith.constant 0 : i32
    return %c0_i32, %c0_i32_0 : i32, i32
  }
  func.func @transform_8(%arg0: i32) -> (i32, i32) {
    %c0_i32 = arith.constant 0 : i32
    %c0_i32_0 = arith.constant 0 : i32
    %c0_i32_1 = arith.constant 0 : i32
    return %c0_i32, %c0_i32_0 : i32, i32
  }
  func.func @transform_9(%arg0: i32) -> (i32, i32) {
    %c0_i32 = arith.constant 0 : i32
    %c0_i32_0 = arith.constant 0 : i32
    %c0_i32_1 = arith.constant 0 : i32
    return %c0_i32, %c0_i32_0 : i32, i32
  }
  func.func @transform_10(%arg0: i32) -> (i32, i32) {
    %c0_i32 = arith.constant 0 : i32
    %c0_i32_0 = arith.constant 0 : i32
    %c0_i32_1 = arith.constant 0 : i32
    return %c0_i32, %c0_i32_0 : i32, i32
  }
  func.func @transform_11(%arg0: i32) -> (i32, i32) {
    %c0_i32 = arith.constant 0 : i32
    %c0_i32_0 = arith.constant 0 : i32
    %c0_i32_1 = arith.constant 0 : i32
    return %c0_i32, %c0_i32_0 : i32, i32
  }
  func.func @transform_12(%arg0: i32) -> (i32, i32) {
    %c0_i32 = arith.constant 0 : i32
    %c0_i32_0 = arith.constant 0 : i32
    %c0_i32_1 = arith.constant 0 : i32
    return %c0_i32, %c0_i32_0 : i32, i32
  }
  func.func @transform_13(%arg0: i32) -> (i32, i32) {
    %c0_i32 = arith.constant 0 : i32
    %c0_i32_0 = arith.constant 0 : i32
    return %c0_i32, %arg0 : i32, i32
  }
}

</mosaic_0001>

<bundles_post_ra>
// kernel: qcritic_forward.1
= control target key start
LH: loop header
LB: loop body
LE: loop exit
PB: predicated region body
PF: predicated region fallthrough
CT: control target
= control target key end

     0   :  { %v746_v0 = vmov 0   ;;  %vm148_vm0 = vcmask 195584   ;;  %vm369_vm1 = vcmask 261120   ;;  %vm748_vm2 = vmmov 0   ;;  %s963_s5 = inlined_call_operand.vmem [shape: f32[24,1], index: 5, kind: input, shape index: {}]   ;;  %s964_s4 = inlined_call_operand.vmem [shape: f32[24,1], index: 4, kind: input, shape index: {}]   ;;  %s965_s12 = inlined_call_operand.<no memory space> [shape: f32[1,1], index: 12, kind: input, shape index: {}]   ;;  %s966_s6 = inlined_call_operand.vmem [shape: f32[32,1], index: 6, kind: input, shape index: {}]   ;;  %s967_s1 = inlined_call_operand.vmem [shape: f32[32,24], index: 1, kind: input, shape index: {}]   ;;  %s968_s7 = inlined_call_operand.vmem [shape: f32[32,1], index: 7, kind: input, shape index: {}]   ;;  %s969_s8 = inlined_call_operand.vmem [shape: f32[32,1], index: 8, kind: input, shape index: {}]   ;;  %s970_s0 = inlined_call_operand.vmem [shape: f32[24,128], index: 0, kind: input, shape index: {}]   ;;  %s971_s9 = inlined_call_operand.vmem [shape: f32[32,1], index: 9, kind: input, shape index: {}]   ;;  %s972_s10 = inlined_call_operand.vmem [shape: f32[32,1], index: 10, kind: input, shape index: {}]   ;;  %s973_s11 = inlined_call_operand.vmem [shape: f32[32,1], index: 11, kind: input, shape index: {}]   ;;  %s974_s2 = inlined_call_operand.vmem [shape: f32[32,32], index: 2, kind: input, shape index: {}]   ;;  %s975_s3 = inlined_call_operand.vmem [shape: f32[1,32], index: 3, kind: input, shape index: {}]   ;;  %s976_s13 = inlined_call_operand.vmem [shape: f32[1,128], index: 13, kind: output, shape index: {}]  }
   0x1   :  { %739 = vset.pattern.permute.xlu1 %v746_v0  ;;  %738 = vset.pattern.permute.xlu0 %v746_v0  ;;  %v99_v1 = vld [vmem:[%s963_s5] sm:$0xff]  ;;  %v18_v3 = vstv %s965_s12  ;;  %v100_v4 = vld [vmem:[%s963_s5 + $0x8] sm:$0xff]  ;;  %v101_v6 = vld [vmem:[%s963_s5 + $0x10] sm:$0xff] }
   0x2   :  { %v78_v2 = vld [vmem:[%s964_s4] sm:$0xff]  ;;  %104 = vperm.xlu1 %739, %v99_v1   ;;  %19 = vst [vmem:[#allocation2] sm:$0x1] %v18_v3  ;;  %v79_v5 = vld [vmem:[%s964_s4 + $0x8] sm:$0xff]  ;;  %v80_v7 = vld [vmem:[%s964_s4 + $0x10] sm:$0xff] }
   0x3   :  { %83 = vperm.xlu0 %738, %v78_v2   ;;  %v125_v8 = vld [vmem:[%s966_s6 + $0x8] sm:$0xff]  ;;  %v124_v9 = vld [vmem:[%s966_s6] sm:$0xff]  ;;  %v127_v10 = vld [vmem:[%s966_s6 + $0x18] sm:$0xff] }
   0x4   :  { %v126_v11 = vld [vmem:[%s966_s6 + $0x10] sm:$0xff]  ;;  %v120_v12 = vld [vmem:[%s967_s1] sm:$0xff]  ;;  %v251_v13 = vld [vmem:[%s968_s7 + $0x8] sm:$0xff] }
   0x5   :  { %685 = vmatprep.mubr.msk.f32.mxu0 %vm148_vm0, %v120_v12  ;;  %v250_v14 = vld [vmem:[%s968_s7] sm:$0xff]  ;;  %v255_v15 = vld [vmem:[%s969_s8 + $0x8] sm:$0xff]  ;;  %v253_v17 = vld [vmem:[%s968_s7 + $0x18] sm:$0xff] }
   0x6   :  { %109 = vperm.xlu1 %739, %v100_v4   ;;  %v254_v16 = vld [vmem:[%s969_s8] sm:$0xff]  ;;  %v252_v18 = vld [vmem:[%s968_s7 + $0x10] sm:$0xff]  ;;  %v47_v20 = vld [vmem:[%s970_s0 + $0x8] sm:$0xff] }
   0x7   :  { %88 = vperm.xlu0 %738, %v79_v5   ;;  %v46_v19 = vld [vmem:[%s970_s0] sm:$0xff]  ;;  %v257_v21 = vld [vmem:[%s969_s8 + $0x18] sm:$0xff]  ;;  %v256_v22 = vld [vmem:[%s969_s8 + $0x10] sm:$0xff] }
   0x8   :  { %v49_v23 = vadd.f32 %v47_v20, %v46_v19  ;;  %v48_v24 = vld [vmem:[%s970_s0 + $0x10] sm:$0xff]  ;;  %v346_v25 = vld [vmem:[%s971_s9 + $0x8] sm:$0xff]  ;;  %v345_v26 = vld [vmem:[%s971_s9] sm:$0xff] }
   0x9   :  { %v348_v28 = vld [vmem:[%s971_s9 + $0x18] sm:$0xff]  ;;  %v347_v29 = vld [vmem:[%s971_s9 + $0x10] sm:$0xff]  ;;  %v472_v31 = vld [vmem:[%s972_s10 + $0x8] sm:$0xff] }
   0xa   :  { %114 = vperm.xlu1 %739, %v101_v6   ;;  %v50_v27 = vadd.f32 %v49_v23, %v48_v24  ;;  %v471_v32 = vld [vmem:[%s972_s10] sm:$0xff]  ;;  %v476_v34 = vld [vmem:[%s973_s11 + $0x8] sm:$0xff]  ;;  %v474_v37 = vld [vmem:[%s972_s10 + $0x18] sm:$0xff] }
   0xb   :  { %93 = vperm.xlu0 %738, %v80_v7   ;;  %v475_v35 = vld [vmem:[%s973_s11] sm:$0xff]  ;;  %v473_v38 = vld [vmem:[%s972_s10 + $0x10] sm:$0xff]  ;;  %v478_v40 = vld [vmem:[%s973_s11 + $0x18] sm:$0xff] }
   0xc   :  { %v51_v30 = vrot.slane %v50_v27, 4  ;;  %v477_v41 = vld [vmem:[%s973_s11 + $0x10] sm:$0xff]  ;;  %v562_v43 = vld [vmem:[#allocation2] sm:$0x1] }
   0xe   :  { %135 = vperm.xlu1 %739, %v125_v8   ;;  %v52_v33 = vadd.f32 %v51_v30, %v50_v27 }
   0xf   :  { %130 = vperm.xlu0 %738, %v124_v9  }
  0x10   :  { %v53_v36 = vrot.slane %v52_v33, 2 }
  0x12   :  { %145 = vperm.xlu1 %739, %v127_v10   ;;  %v54_v39 = vadd.f32 %v53_v36, %v52_v33 }
  0x13   :  { %140 = vperm.xlu0 %738, %v126_v11  }
  0x14   :  { %v55_v42 = vrot.slane %v54_v39, 1 }
  0x16   :  { %300 = vperm.xlu1 %739, %v251_v13   ;;  %v56_v44 = vadd.f32 %v55_v42, %v54_v39 }
  0x17   :  { %295 = vperm.xlu0 %738, %v250_v14  }
  0x18   :  { %v57_v45 = vmul.f32 0.041666668, %v56_v44 }
  0x1a   :  { %324 = vperm.xlu1 %739, %v255_v15   ;;  %v58_v46 = vsub.f32 %v46_v19, %v57_v45  ;;  %v59_v47 = vsub.f32 %v47_v20, %v57_v45  ;;  %v60_v48 = vsub.f32 %v48_v24, %v57_v45  ;;  %v121_v15 = vld [vmem:[%s967_s1 + $0x8] sm:$0xff] }
  0x1b   :  { %319 = vperm.xlu0 %738, %v254_v16   ;;  %v122_v16 = vld [vmem:[%s967_s1 + $0x10] sm:$0xff] }
  0x1c   :  { %v61_v49 = vmul.f32 %v58_v46, %v58_v46  ;;  %v62_v50 = vmul.f32 %v59_v47, %v59_v47  ;;  %v63_v51 = vmul.f32 %v60_v48, %v60_v48 }
  0x1e   :  { %310 = vperm.xlu1 %739, %v253_v17   ;;  %v64_v52 = vadd.f32 %v62_v50, %v61_v49  ;;  %v123_v17 = vld [vmem:[%s967_s1 + $0x18] sm:$0xff] }
  0x1f   :  { %305 = vperm.xlu0 %738, %v252_v18   ;;  %v341_v18 = vld [vmem:[%s974_s2] sm:$0xff] }
  0x20   :  { %v65_v53 = vadd.f32 %v64_v52, %v63_v51  ;;  %699 = vmatprep.mubr.msk.f32.mxu1 %vm369_vm1, %v341_v18 }
  0x22   :  { %334 = vperm.xlu1 %739, %v257_v21   ;;  %v66_v54 = vrot.slane %v65_v53, 4 }
  0x23   :  { %329 = vperm.xlu0 %738, %v256_v22  }
  0x24   :  { %v67_v55 = vadd.f32 %v66_v54, %v65_v53 }
  0x26   :  { %356 = vperm.xlu1 %739, %v346_v25   ;;  %v68_v56 = vrot.slane %v67_v55, 2 }
  0x27   :  { %351 = vperm.xlu0 %738, %v345_v26  }
  0x28   :  { %v69_v57 = vadd.f32 %v68_v56, %v67_v55 }
  0x2a   :  { %366 = vperm.xlu1 %739, %v348_v28   ;;  %v70_v58 = vrot.slane %v69_v57, 1 }
  0x2b   :  { %361 = vperm.xlu0 %738, %v347_v29  }
  0x2c   :  { %v71_v59 = vadd.f32 %v70_v58, %v69_v57 }
  0x2e   :  { %520 = vperm.xlu1 %739, %v472_v31   ;;  %v72_v60 = vmul.f32 0.041666668, %v71_v59 }
  0x2f   :  { %515 = vperm.xlu0 %738, %v471_v32  }
  0x30   :  { %v73_v61 = vadd.f32 1e-05, %v72_v60 }
  0x32   :  { %544 = vperm.xlu1 %739, %v476_v34   ;;  %740 = vrsqrt.f32 %v73_v61 }
  0x33   :  { %539 = vperm.xlu0 %738, %v475_v35  }
  0x36   :  { %530 = vperm.xlu1 %739, %v474_v37  }
  0x37   :  { %525 = vperm.xlu0 %738, %v473_v38  }
  0x3a   :  { %554 = vperm.xlu1 %739, %v478_v40  }
  0x3b   :  { %549 = vperm.xlu0 %738, %v477_v41  }
  0x3c   :  { %v741_v62 = vpop.eup %740 }
  0x3d   :  { %v75_v63 = vmul.f32 %v741_v62, %v58_v46  ;;  %v76_v2 = vmul.f32 %v741_v62, %v59_v47  ;;  %v77_v7 = vmul.f32 %v741_v62, %v60_v48 }
  0x3f   :  { %565 = vperm.xlu0 %738, %v562_v43  }
  0x81   :  { %v105_v0 = vpop.permute.xlu1 %104 }
  0x82   :  { %v84_v1 = vpop.permute.xlu0 %83 }
  0x83   :  { %v96_v3 = vmul.f32 %v84_v1, %v75_v63 }
  0x85   :  { %v110_v4 = vpop.permute.xlu1 %109  ;;  %v117_v8 = vadd.f32 %v105_v0, %v96_v3 }
  0x86   :  { %v89_v5 = vpop.permute.xlu0 %88 }
  0x87   :  { %v97_v6 = vmul.f32 %v89_v5, %v76_v2 }
  0x89   :  { %v118_v9 = vadd.f32 %v110_v4, %v97_v6  ;;  %v115_v13 = vpop.permute.xlu1 %114 }
  0x8a   :  { %v94_v10 = vpop.permute.xlu0 %93 }
  0x8b   :  { %v98_v11 = vmul.f32 %v94_v10, %v77_v7  ;;  %v716_v12 = vpack.c.bf16 %v118_v9, %v117_v8 }
  0x8d   :  { %v119_v14 = vadd.f32 %v115_v13, %v98_v11  ;;  %717 = vmatprep.subr.bf16.mxu0 %v716_v12  ;;  %v136_v19 = vpop.permute.xlu1 %135 }
  0x8e   :  { %719 = vmatpush3.bf16.msra.mxu0 %v716_v12  ;;  %v131_v20 = vpop.permute.xlu0 %130 }
  0x8f   :  { %683 = vmatprep.subr.mxu0 %v119_v14 }
  0x91   :  { %v146_v26 = vpop.permute.xlu1 %145 }
  0x92   :  { %684 = vmatpush3.msra.mxu0 %v119_v14  ;;  %v141_v29 = vpop.permute.xlu0 %140 }
  0x93   :  { %686 = vmatmul.mubr.msk.f32.vlgmr.msra.gmra.mrb[0].mxu0 %vm148_vm0, %v121_v15 }
  0x94   :  { %688 = vmatprep.mubr.msk.f32.mxu0 %vm148_vm0, %v122_v16 }
  0x95   :  { %v301_v62 = vpop.permute.xlu1 %300 }
  0x96   :  { %v296_v63 = vpop.permute.xlu0 %295 }
  0x97   :  { %689 = vmatmul.mubr.msk.f32.gmra.mrb[2].mxu0 %vm148_vm0, %v123_v17 }
  0x99   :  { %v325_v2 = vpop.permute.xlu1 %324 }
  0x9a   :  { %v320_v3 = vpop.permute.xlu0 %319 }
  0x9d   :  { %v311_v4 = vpop.permute.xlu1 %310 }
  0x9e   :  { %v306_v5 = vpop.permute.xlu0 %305 }
  0xa1   :  { %v335_v15 = vpop.permute.xlu1 %334 }
  0xa2   :  { %v330_v16 = vpop.permute.xlu0 %329 }
 0x166   :  { %v687_v21 = vpop.f32.mrb[0].mxu0 }
 0x167   :  { %v233_v22 = vadd.f32 %v687_v21, %v136_v19  ;;  %v227_v23 = vpop.f32.mrb[1].mxu0 }
 0x168   :  { %v228_v24 = vadd.f32 %v227_v23, %v131_v20  ;;  %v342_v23 = vld [vmem:[%s974_s2 + $0x8] sm:$0xff] }
 0x169   :  { %v247_v25 = vmax.f32 %v233_v22, 0.0 }
 0x16a   :  { %v246_v27 = vmax.f32 %v228_v24, 0.0  ;;  %v690_v28 = vpop.f32.mrb[2].mxu0  ;;  %v343_v24 = vld [vmem:[%s974_s2 + $0x10] sm:$0xff] }
 0x16b   :  { %v237_v30 = vpop.f32.mrb[3].mxu0  ;;  %v243_v32 = vadd.f32 %v690_v28, %v146_v26  ;;  %v747_v26 = vmov 0.0|0.0   ;;  %v357_v28 = vpop.permute.xlu1 %356 }
 0x16c   :  { %v258_v31 = vadd.f32 %v247_v25, %v246_v27  ;;  %v238_v33 = vadd.f32 %v237_v30, %v141_v29  ;;  %728 = vmatprep.subr.bf16.mxu0 %v747_v26  ;;  %v352_v29 = vpop.permute.xlu0 %351 }
 0x16d   :  { %v249_v35 = vmax.f32 %v243_v32, 0.0 }
 0x16e   :  { %v248_v34 = vmax.f32 %v238_v33, 0.0 }
 0x170   :  { %v259_v36 = vadd.f32 %v258_v31, %v248_v34 }
 0x172   :  { %v260_v37 = vadd.f32 %v259_v36, %v249_v35 }
 0x174   :  { %v261_v38 = vrot.slane %v260_v37, 4 }
 0x176   :  { %v262_v39 = vadd.f32 %v261_v38, %v260_v37  ;;  %v362_v38 = vpop.permute.xlu0 %361 }
 0x178   :  { %v263_v40 = vrot.slane %v262_v39, 2 }
 0x17a   :  { %v264_v41 = vadd.f32 %v263_v40, %v262_v39 }
 0x17c   :  { %v265_v42 = vrot.slane %v264_v41, 1 }
 0x17e   :  { %v266_v43 = vadd.f32 %v265_v42, %v264_v41 }
 0x180   :  { %v268_v44 = vmul.f32 0.03125, %v266_v43 }
 0x182   :  { %v269_v45 = vsub.f32 %v246_v27, %v268_v44  ;;  %v270_v46 = vsub.f32 %v247_v25, %v268_v44  ;;  %v271_v47 = vsub.f32 %v248_v34, %v268_v44  ;;  %v272_v48 = vsub.f32 %v249_v35, %v268_v44  ;;  %v344_v25 = vld [vmem:[%s974_s2 + $0x18] sm:$0xff]  ;;  %v367_v35 = vpop.permute.xlu1 %366 }
 0x183   :  { %v749_v27 = vmov 0.0  }
 0x184   :  { %v273_v49 = vmul.f32 %v269_v45, %v269_v45  ;;  %v274_v50 = vmul.f32 %v270_v46, %v270_v46  ;;  %v275_v51 = vmul.f32 %v271_v47, %v271_v47  ;;  %v276_v53 = vmul.f32 %v272_v48, %v272_v48  ;;  %713 = vmatprep.mubr.msk.f32.mxu0 %vm748_vm2, %v749_v27 }
 0x186   :  { %v277_v52 = vadd.f32 %v274_v50, %v273_v49 }
 0x188   :  { %v278_v54 = vadd.f32 %v277_v52, %v275_v51 }
 0x18a   :  { %v279_v55 = vadd.f32 %v278_v54, %v276_v53 }
 0x18c   :  { %v280_v56 = vrot.slane %v279_v55, 4 }
 0x18e   :  { %v281_v57 = vadd.f32 %v280_v56, %v279_v55 }
 0x190   :  { %v282_v58 = vrot.slane %v281_v57, 2 }
 0x192   :  { %v283_v59 = vadd.f32 %v282_v58, %v281_v57 }
 0x194   :  { %v284_v60 = vrot.slane %v283_v59, 1 }
 0x196   :  { %v285_v61 = vadd.f32 %v284_v60, %v283_v59 }
 0x198   :  { %v286_v0 = vmul.f32 0.03125, %v285_v61 }
 0x19a   :  { %v287_v1 = vadd.f32 1e-05, %v286_v0 }
 0x19c   :  { %742 = vrsqrt.f32 %v287_v1 }
 0x1a6   :  { %v743_v6 = vpop.eup %742 }
 0x1a7   :  { %v291_v7 = vmul.f32 %v743_v6, %v271_v47  ;;  %v289_v8 = vmul.f32 %v743_v6, %v269_v45  ;;  %v290_v9 = vmul.f32 %v743_v6, %v270_v46  ;;  %v292_v10 = vmul.f32 %v743_v6, %v272_v48 }
 0x1a9   :  { %v315_v11 = vmul.f32 %v306_v5, %v291_v7  ;;  %v313_v12 = vmul.f32 %v296_v63, %v289_v8  ;;  %v314_v13 = vmul.f32 %v301_v62, %v290_v9  ;;  %v316_v14 = vmul.f32 %v311_v4, %v292_v10  ;;  %v521_v7 = vpop.permute.xlu1 %520  ;;  %v516_v8 = vpop.permute.xlu0 %515 }
 0x1ab   :  { %v337_v17 = vadd.f32 %v320_v3, %v313_v12  ;;  %v338_v18 = vadd.f32 %v325_v2, %v314_v13  ;;  %v339_v19 = vadd.f32 %v330_v16, %v315_v11  ;;  %v340_v20 = vadd.f32 %v335_v15, %v316_v14 }
 0x1ad   :  { %v720_v21 = vpack.c.bf16 %v338_v18, %v337_v17  ;;  %v724_v22 = vpack.c.bf16 %v340_v20, %v339_v19  ;;  %v545_v11 = vpop.permute.xlu1 %544  ;;  %v540_v12 = vpop.permute.xlu0 %539 }
 0x1af   :  { %721 = vmatprep.subr.bf16.mxu1 %v720_v21 }
 0x1b0   :  { %723 = vmatpush3.bf16.msra.mxu1 %v720_v21 }
 0x1b1   :  { %725 = vmatprep.subr.bf16.mxu1 %v724_v22  ;;  %v531_v13 = vpop.permute.xlu1 %530  ;;  %v526_v14 = vpop.permute.xlu0 %525 }
 0x1b4   :  { %727 = vmatpush3.bf16.msra.mxu1 %v724_v22 }
 0x1b7   :  { %700 = vmatmul.mubr.msk.f32.vlgmr.msra.gmra.mrb[0].mxu1 %vm369_vm1, %v342_v23 }
 0x1b8   :  { %702 = vmatprep.mubr.msk.f32.mxu1 %vm369_vm1, %v343_v24  ;;  %v555_v24 = vpop.permute.xlu1 %554 }
 0x1bb   :  { %703 = vmatmul.mubr.msk.f32.gmra.mrb[2].mxu1 %vm369_vm1, %v344_v25  ;;  %v550_v25 = vpop.permute.xlu0 %549 }
 0x28a   :  { %v701_v30 = vpop.f32.mrb[0].mxu1 }
 0x28b   :  { %v454_v31 = vadd.f32 %v701_v30, %v357_v28  ;;  %v448_v32 = vpop.f32.mrb[1].mxu1 }
 0x28c   :  { %v449_v33 = vadd.f32 %v448_v32, %v352_v29 }
 0x28d   :  { %v468_v34 = vmax.f32 %v454_v31, 0.0 }
 0x28e   :  { %v467_v36 = vmax.f32 %v449_v33, 0.0  ;;  %v704_v37 = vpop.f32.mrb[2].mxu1  ;;  %v561_v33 = vld [vmem:[%s975_s3] sm:$0x1] }
 0x28f   :  { %v458_v39 = vpop.f32.mrb[3].mxu1  ;;  %v464_v41 = vadd.f32 %v704_v37, %v367_v35  ;;  %v566_v37 = vpop.permute.xlu0 %565 }
 0x290   :  { %v479_v40 = vadd.f32 %v468_v34, %v467_v36  ;;  %v459_v42 = vadd.f32 %v458_v39, %v362_v38 }
 0x291   :  { %v470_v44 = vmax.f32 %v464_v41, 0.0 }
 0x292   :  { %v469_v43 = vmax.f32 %v459_v42, 0.0 }
 0x294   :  { %v480_v45 = vadd.f32 %v479_v40, %v469_v43 }
 0x296   :  { %v481_v46 = vadd.f32 %v480_v45, %v470_v44 }
 0x298   :  { %v482_v47 = vrot.slane %v481_v46, 4 }
 0x29a   :  { %v483_v48 = vadd.f32 %v482_v47, %v481_v46 }
 0x29c   :  { %v484_v49 = vrot.slane %v483_v48, 2 }
 0x29e   :  { %v485_v50 = vadd.f32 %v484_v49, %v483_v48 }
 0x2a0   :  { %v486_v51 = vrot.slane %v485_v50, 1 }
 0x2a2   :  { %v487_v52 = vadd.f32 %v486_v51, %v485_v50 }
 0x2a4   :  { %v488_v53 = vmul.f32 0.03125, %v487_v52 }
 0x2a6   :  { %v489_v54 = vsub.f32 %v467_v36, %v488_v53  ;;  %v490_v55 = vsub.f32 %v468_v34, %v488_v53  ;;  %v491_v56 = vsub.f32 %v469_v43, %v488_v53  ;;  %v492_v57 = vsub.f32 %v470_v44, %v488_v53 }
 0x2a7   :  { %v568_v34 = vlaneseq }
 0x2a8   :  { %v493_v58 = vmul.f32 %v489_v54, %v489_v54  ;;  %v494_v59 = vmul.f32 %v490_v55, %v490_v55  ;;  %v495_v60 = vmul.f32 %v491_v56, %v491_v56  ;;  %v496_v62 = vmul.f32 %v492_v57, %v492_v57 }
 0x2a9   :  { %v569_v35 = vshrl.u32 %v568_v34, 7 }
 0x2aa   :  { %v497_v61 = vadd.f32 %v494_v59, %v493_v58 }
 0x2ab   :  { %v570_v36 = vsub.s32 0, %v569_v35 }
 0x2ac   :  { %v498_v63 = vadd.f32 %v497_v61, %v495_v60 }
 0x2ad   :  { %v571_v38 = vrot.slane %v566_v37, %v570_v36 }
 0x2ae   :  { %v499_v0 = vadd.f32 %v498_v63, %v496_v62 }
 0x2b0   :  { %v500_v1 = vrot.slane %v499_v0, 4 }
 0x2b2   :  { %v501_v2 = vadd.f32 %v500_v1, %v499_v0 }
 0x2b4   :  { %v502_v3 = vrot.slane %v501_v2, 2 }
 0x2b6   :  { %v503_v4 = vadd.f32 %v502_v3, %v501_v2 }
 0x2b8   :  { %v504_v5 = vrot.slane %v503_v4, 1 }
 0x2ba   :  { %v505_v6 = vadd.f32 %v504_v5, %v503_v4 }
 0x2bc   :  { %v506_v9 = vmul.f32 0.03125, %v505_v6 }
 0x2be   :  { %v507_v10 = vadd.f32 1e-05, %v506_v9 }
 0x2c0   :  { %744 = vrsqrt.f32 %v507_v10 }
 0x2ca   :  { %v745_v15 = vpop.eup %744 }
 0x2cb   :  { %v511_v16 = vmul.f32 %v745_v15, %v491_v56  ;;  %v509_v17 = vmul.f32 %v745_v15, %v489_v54  ;;  %v510_v18 = vmul.f32 %v745_v15, %v490_v55  ;;  %v512_v19 = vmul.f32 %v745_v15, %v492_v57 }
 0x2cd   :  { %v535_v20 = vmul.f32 %v526_v14, %v511_v16  ;;  %v533_v21 = vmul.f32 %v516_v8, %v509_v17  ;;  %v534_v22 = vmul.f32 %v521_v7, %v510_v18  ;;  %v536_v23 = vmul.f32 %v531_v13, %v512_v19 }
 0x2cf   :  { %v559_v27 = vadd.f32 %v550_v25, %v535_v20  ;;  %v557_v28 = vadd.f32 %v540_v12, %v533_v21  ;;  %v558_v29 = vadd.f32 %v545_v11, %v534_v22  ;;  %v560_v30 = vadd.f32 %v555_v24, %v536_v23 }
 0x2d1   :  { %v729_v31 = vpack.c.bf16 %v558_v29, %v557_v28  ;;  %v732_v32 = vpack.c.bf16 %v560_v30, %v559_v27 }
 0x2d3   :  { %730 = vmatpush3.bf16.msra.mxu0 %v729_v31 }
 0x2d4   :  { %731 = vmatprep.subr.bf16.mxu0 %v747_v26 }
 0x2d7   :  { %733 = vmatpush3.bf16.msra.mxu0 %v732_v32 }
 0x2da   :  { %714 = vmatmul.mubr.msk.f32.vlgmr.msra.gmra.mrb[4].mxu0 %vm369_vm1, %v561_v33 }
 0x3ad   :  { %v641_v39 = vpop.f32.mrb[4].mxu0 }
 0x3ae   :  { %v642_v40 = vadd.f32 %v641_v39, %v571_v38  ;;  %v715_v41 = vpop.f32.mrb[5].mxu0 }
 0x3b0   :  { %645 = vst [vmem:[%s976_s13] sm:$0x1] %v642_v40 }

</bundles_post_ra>
